<compile_context>
chip_gen: v7x
topology: tpu7x:2x2x1
jax: 0.10.0
libtpu: 0.0.40
codegen_flags: <defaults>
</compile_context>

<pallas_src>
import functools

import jax
import jax.numpy as jnp
from jax.experimental import pallas as pl
from jax.experimental.pallas import tpu as pltpu

BN_EPS = 1e-5
LANE = 128
C_TILE = 128  # classifier columns (logit lanes) per grid step


def _head_kernel(x_ref, gamma_ref, beta_ref, wt_ref, logits_ref, *, inv_b):
    # x_ref:      (B, D)       global_feat (f32), full batch resident (batch-stat BN)
    # gamma_ref:  (1, D)       BatchNorm1d weight (init 1.0)
    # beta_ref:   (1, D)       BatchNorm1d bias   (init 0.0, grad frozen in the module)
    # wt_ref:     (D, C_TILE)  classifier weight tile, pre-transposed, bf16
    # logits_ref: (B, C_TILE)  cls_score tile (f32)
    x = x_ref[...]

    # BatchNorm1d (training mode): single dependency-free pass over the batch axis.
    s = jnp.sum(x, axis=0, keepdims=True)            # (1, D)
    sq = jnp.sum(x * x, axis=0, keepdims=True)       # (1, D)
    mean = s * inv_b
    var = jnp.maximum(sq * inv_b - mean * mean, 0.0)  # biased variance, clamped for FP safety
    inv_std = jax.lax.rsqrt(var + BN_EPS)

    # Fold BN into one scale + shift applied to x.
    scale = inv_std * gamma_ref[...]                  # (1, D)
    shift = beta_ref[...] - mean * scale              # (1, D)
    feat = (x * scale + shift).astype(jnp.bfloat16)   # (B, D), bf16 for the MXU

    # Bias-free linear classifier tile: bf16 x bf16 -> f32 accumulate on the MXU.
    logits_ref[...] = jnp.dot(
        feat, wt_ref[...], preferred_element_type=jnp.float32
    ).astype(logits_ref.dtype)


def prepare_head_params(bn_gamma, bn_beta, cls_weight):
    """One-time parameter prep (do this at init, NOT per forward call).

    Transposes the (C, D) torch-layout classifier weight to (D, C), pads C up to a
    multiple of 128 for lane-dense logits stores, and casts the weight to bf16.
    """
    C, D = cls_weight.shape
    c_pad = (-C) % LANE
    w_t = jnp.transpose(cls_weight).astype(jnp.bfloat16)  # (D, C)
    if c_pad:
        w_t = jnp.pad(w_t, ((0, 0), (0, c_pad)))
    return {
        "gamma": bn_gamma.reshape(1, D).astype(jnp.float32),
        "beta": bn_beta.reshape(1, D).astype(jnp.float32),
        "w_t": w_t,  # (D, C_padded) bf16
        "num_classes": C,
    }


def build_transformer_head(global_feat, params):
    """Returns (cls_score, global_feat), matching the training branch of forward()."""
    B, D = global_feat.shape
    w_t = params["w_t"]
    C = params["num_classes"]
    Cp = w_t.shape[1]
    assert Cp % C_TILE == 0
    n_tiles = Cp // C_TILE

    kernel = functools.partial(_head_kernel, inv_b=1.0 / B)

    logits = pl.pallas_call(
        kernel,
        out_shape=jax.ShapeDtypeStruct((B, Cp), jnp.float32),
        grid=(n_tiles,),
        in_specs=[
            pl.BlockSpec((B, D), lambda j: (0, 0)),        # full batch (batch-stat BN)
            pl.BlockSpec((1, D), lambda j: (0, 0)),
            pl.BlockSpec((1, D), lambda j: (0, 0)),
            pl.BlockSpec((D, C_TILE), lambda j: (0, j)),   # column tile of W^T
        ],
        out_specs=pl.BlockSpec((B, C_TILE), lambda j: (0, j)),
        compiler_params=pltpu.CompilerParams(
            dimension_semantics=("parallel",),  # independent column tiles -> both TCs on v7x
        ),
    )(global_feat.astype(jnp.float32), params["gamma"], params["beta"], w_t)

    cls_score = logits[:, :C] if Cp != C else logits
    return cls_score, global_feat


def _reference(global_feat, bn_gamma, bn_beta, cls_weight):
    x = global_feat.astype(jnp.float32)
    mean = jnp.mean(x, axis=0, keepdims=True)
    var = jnp.mean((x - mean) ** 2, axis=0, keepdims=True)
    feat = (x - mean) / jnp.sqrt(var + BN_EPS) * bn_gamma[None, :] + bn_beta[None, :]
    logits = feat @ cls_weight.T
    return logits, feat


if __name__ == "__main__":
    # Shapes consistent with the module: in_planes = 384 ("small"/384 Transformer_TYPE),
    # small batch = 8, num_classes = 128 (already lane-aligned; padding path is general).
    B, D, C = 8, 384, 128

    key = jax.random.PRNGKey(0)
    k_feat, k_w = jax.random.split(key)

    # Deterministic synthetic "backbone output".
    global_feat = jax.random.normal(k_feat, (B, D), dtype=jnp.float32)

    # Parameter init mirroring the module's __init__:
    #   bottleneck (BatchNorm1d): weights_init_kaiming -> gamma=1, beta=0
    #   classifier (Linear, bias=False): weights_init_classifier -> N(0, 0.001)
    bn_gamma = jnp.ones((D,), dtype=jnp.float32)
    bn_beta = jnp.zeros((D,), dtype=jnp.float32)
    cls_weight = 0.001 * jax.random.normal(k_w, (C, D), dtype=jnp.float32)

    # One-time prep (transpose / pad / bf16) outside the per-call path.
    params = prepare_head_params(bn_gamma, bn_beta, cls_weight)

    cls_score, gfeat_out = build_transformer_head(global_feat, params)
    jax.block_until_ready((cls_score, gfeat_out))

    ref_logits, ref_feat = _reference(global_feat, bn_gamma, bn_beta, cls_weight)
    assert cls_score.shape == (B, C)
    assert gfeat_out.shape == (B, D)
    assert jnp.allclose(gfeat_out, global_feat)
    # bf16 weights/activations in the matmul -> slightly relaxed tolerance vs f32 reference.
    assert jnp.allclose(cls_score, ref_logits, atol=1e-3, rtol=2e-2)

    print("KERNEL_OK")
</pallas_src>

<mosaic_0001>
module attributes {stable_mosaic.version = 11 : i64} {
  func.func @_head_kernel(%arg0: i32, %arg1: memref<8x384xf32, #tpu.memory_space<vmem>>, %arg2: memref<1x384xf32, #tpu.memory_space<vmem>>, %arg3: memref<1x384xf32, #tpu.memory_space<vmem>>, %arg4: memref<384x128xbf16, #tpu.memory_space<vmem>>, %arg5: memref<8x128xf32, #tpu.memory_space<vmem>>) attributes {dimension_semantics = [#tpu.dimension_semantics<parallel>], iteration_bounds = array<i64: 1>, scalar_prefetch = 0 : i64, scratch_operands = 0 : i64, tpu.core_type = #tpu.core_type<tc>, window_params = [{pipeline_mode = #tpu.pipeline_mode<synchronous>, transform_indices = @transform_0, window_bounds = array<i64: 8, 384>}, {pipeline_mode = #tpu.pipeline_mode<synchronous>, transform_indices = @transform_1, window_bounds = array<i64: 1, 384>}, {pipeline_mode = #tpu.pipeline_mode<synchronous>, transform_indices = @transform_2, window_bounds = array<i64: 1, 384>}, {transform_indices = @transform_3, window_bounds = array<i64: 384, 128>}, {transform_indices = @transform_4, window_bounds = array<i64: 8, 128>}]} {
    %c0 = arith.constant 0 : index
    %c0_0 = arith.constant 0 : index
    %0 = vector.load %arg1[%c0, %c0_0] : memref<8x384xf32, #tpu.memory_space<vmem>>, vector<8x384xf32>
    %cst = arith.constant dense<0.000000e+00> : vector<384xf32>
    %1 = vector.multi_reduction <add>, %0, %cst [0] : vector<8x384xf32> to vector<384xf32>
    %2 = vector.shape_cast %1 : vector<384xf32> to vector<1x384xf32>
    %3 = arith.mulf %0, %0 : vector<8x384xf32>
    %cst_1 = arith.constant dense<0.000000e+00> : vector<384xf32>
    %4 = vector.multi_reduction <add>, %3, %cst_1 [0] : vector<8x384xf32> to vector<384xf32>
    %5 = vector.shape_cast %4 : vector<384xf32> to vector<1x384xf32>
    %cst_2 = arith.constant 1.250000e-01 : f32
    %6 = vector.broadcast %cst_2 : f32 to vector<1x384xf32>
    %7 = arith.mulf %2, %6 : vector<1x384xf32>
    %cst_3 = arith.constant 1.250000e-01 : f32
    %8 = vector.broadcast %cst_3 : f32 to vector<1x384xf32>
    %9 = arith.mulf %5, %8 : vector<1x384xf32>
    %10 = arith.mulf %7, %7 : vector<1x384xf32>
    %11 = arith.subf %9, %10 : vector<1x384xf32>
    %cst_4 = arith.constant 0.000000e+00 : f32
    %12 = vector.broadcast %cst_4 : f32 to vector<1x384xf32>
    %13 = arith.maximumf %11, %12 : vector<1x384xf32>
    %cst_5 = arith.constant 9.99999974E-6 : f32
    %14 = vector.broadcast %cst_5 : f32 to vector<1x384xf32>
    %15 = arith.addf %13, %14 : vector<1x384xf32>
    %16 = math.rsqrt %15 : vector<1x384xf32>
    %c0_6 = arith.constant 0 : index
    %c0_7 = arith.constant 0 : index
    %17 = vector.load %arg2[%c0_6, %c0_7] : memref<1x384xf32, #tpu.memory_space<vmem>>, vector<1x384xf32>
    %18 = arith.mulf %16, %17 : vector<1x384xf32>
    %c0_8 = arith.constant 0 : index
    %c0_9 = arith.constant 0 : index
    %19 = vector.load %arg3[%c0_8, %c0_9] : memref<1x384xf32, #tpu.memory_space<vmem>>, vector<1x384xf32>
    %20 = arith.mulf %7, %18 : vector<1x384xf32>
    %21 = arith.subf %19, %20 : vector<1x384xf32>
    %22 = vector.broadcast %18 : vector<1x384xf32> to vector<8x384xf32>
    %23 = arith.mulf %0, %22 : vector<8x384xf32>
    %24 = vector.broadcast %21 : vector<1x384xf32> to vector<8x384xf32>
    %25 = arith.addf %23, %24 : vector<8x384xf32>
    %26 = arith.truncf %25 : vector<8x384xf32> to vector<8x384xbf16>
    %c0_10 = arith.constant 0 : index
    %c0_11 = arith.constant 0 : index
    %27 = vector.load %arg4[%c0_10, %c0_11] : memref<384x128xbf16, #tpu.memory_space<vmem>>, vector<384x128xbf16>
    %cst_12 = arith.constant dense<0.000000e+00> : vector<8x128xf32>
    %28 = tpu.matmul %26, %27, %cst_12 {dimension_numbers = #tpu.dot_dimension_numbers<[1], [0], [0], [1], [0, 0, 1, 1], [], []>} : vector<8x384xbf16>, vector<384x128xbf16>, vector<8x128xf32> -> vector<8x128xf32>
    %c0_13 = arith.constant 0 : index
    %c0_14 = arith.constant 0 : index
    %29 = vector.load %arg5[%c0_13, %c0_14] : memref<8x128xf32, #tpu.memory_space<vmem>>, vector<8x128xf32>
    tpu.vector_store %arg5[%c0_13, %c0_14], %28 {strides = array<i32>} : memref<8x128xf32, #tpu.memory_space<vmem>>, vector<8x128xf32>,
    return
  }
  func.func @transform_0(%arg0: i32) -> (i32, i32) {
    %c0_i32 = arith.constant 0 : i32
    %c0_i32_0 = arith.constant 0 : i32
    %c0_i32_1 = arith.constant 0 : i32
    return %c0_i32, %c0_i32_0 : i32, i32
  }
  func.func @transform_1(%arg0: i32) -> (i32, i32) {
    %c0_i32 = arith.constant 0 : i32
    %c0_i32_0 = arith.constant 0 : i32
    %c0_i32_1 = arith.constant 0 : i32
    return %c0_i32, %c0_i32_0 : i32, i32
  }
  func.func @transform_2(%arg0: i32) -> (i32, i32) {
    %c0_i32 = arith.constant 0 : i32
    %c0_i32_0 = arith.constant 0 : i32
    %c0_i32_1 = arith.constant 0 : i32
    return %c0_i32, %c0_i32_0 : i32, i32
  }
  func.func @transform_3(%arg0: i32) -> (i32, i32) {
    %c0_i32 = arith.constant 0 : i32
    %c0_i32_0 = arith.constant 0 : i32
    return %c0_i32, %arg0 : i32, i32
  }
  func.func @transform_4(%arg0: i32) -> (i32, i32) {
    %c0_i32 = arith.constant 0 : i32
    %c0_i32_0 = arith.constant 0 : i32
    return %c0_i32, %arg0 : i32, i32
  }
}

</mosaic_0001>

<bundles_post_ra>
// kernel: tpu_custom_call.1
= control target key start
LH: loop header
LB: loop body
LE: loop exit
PB: predicated region body
PF: predicated region fallthrough
CT: control target
= control target key end

     0   :  { %9 = vsyncpa [#allocation3], 0  ;;  %s783_s0 = inlined_call_operand.hbm [shape: f32[8,384], index: 0, kind: input, shape index: {}]   ;;  %s784_s1 = inlined_call_operand.vmem [shape: f32[1,384], index: 1, kind: input, shape index: {}]   ;;  %s785_s2 = inlined_call_operand.vmem [shape: f32[1,384], index: 2, kind: input, shape index: {}]   ;;  %s786_s3 = inlined_call_operand.hbm [shape: bf16[384,128], index: 3, kind: input, shape index: {}]   ;;  %s787_s4 = inlined_call_operand.hbm [shape: f32[8,128], index: 4, kind: output, shape index: {}]  }
   0x1   :  { %10 = vsyncpa [#allocation6], 0 }
   0x2   :  { %11 = vsyncpa [#allocation4], 0  ;;  %s671_s15 = smov [#allocation2]   ;;  %s672_s17 = smov [#allocation5]  }
   0x3   :  { %s18_s16 = sshll.u32 %s671_s15, 4  ;;  %s31_s18 = sshll.u32 %s672_s17, 4  ;;  %s19_s16 = int_to_ptr.vmem [resolvable:$true] %s18_s16  ;;  %s704_s18 = int_to_ptr.vmem [resolvable:$true] %s31_s18 }
   0x4   :  { %s599_s21 = scalar_lea.hbm %s783_s0, 384 }
   0x5   :  { %p600_p0 = scmp.ne.s32.totalorder %s783_s0, %s599_s21  ;;  %p603_p1 = scmp.lt.u32.totalorder %s599_s21, %s783_s0 }
   0x7   :  { %p605_p2 = pnand %p603_p1, %p600_p0 }
   0x9   :  { %608 = shalt.err (!%p605_p2)
}
   0xa   :  { %s609_s26 = scalar_lea.vmem %s19_s16, 384  ;;  %p614_p4 = scmp.lt.s32.totalorder %s19_s16, %s19_s16 }
   0xb   :  { %p610_p3 = scmp.ne.s32.totalorder %s19_s16, %s609_s26  ;;  %p615_p5 = scmp.lt.s32.totalorder %s609_s26, %s609_s26 }
   0xd   :  { %p616_p6 = por %p615_p5, %p614_p4 }
   0xf   :  { %p617_p7 = pnand %p616_p6, %p610_p3 }
  0x11   :  { %620 = shalt.err (!%p617_p7)
}
  0x12   :  { %21 = dma.hbm_to_vmem [thread:$0]  %s783_s0, 384, %s19_s16, [#allocation3]  }
  0x13   :  { %s621_s5 = scalar_lea.hbm %s786_s3, 3072 }
  0x14   :  { %p622_p8 = scmp.ne.s32.totalorder %s786_s3, %s621_s5  ;;  %p625_p9 = scmp.lt.u32.totalorder %s621_s5, %s786_s3 }
  0x16   :  { %p627_p10 = pnand %p625_p9, %p622_p8 }
  0x18   :  { %630 = shalt.err (!%p627_p10)
}
  0x19   :  { %s631_s10 = scalar_lea.vmem %s704_s18, 3072  ;;  %p636_p12 = scmp.lt.s32.totalorder %s704_s18, %s704_s18 }
  0x1a   :  { %p632_p11 = scmp.ne.s32.totalorder %s704_s18, %s631_s10  ;;  %p637_p13 = scmp.lt.s32.totalorder %s631_s10, %s631_s10 }
  0x1c   :  { %p638_p0 = por %p637_p13, %p636_p12 }
  0x1e   :  { %p639_p1 = pnand %p638_p0, %p632_p11 }
  0x20   :  { %642 = shalt.err (!%p639_p1)
}
  0x21   :  { %s673_s0 = smov 64   ;;  %s674_s11 = smov 4  }
  0x22   :  { %37 = dma.hbm_to_vmem [thread:$0]  %s786_s3, 3072, %s704_s18, [#allocation6], %s673_s0, %s673_s0, %s674_s11  }
  0x23   :  { %665 = dma.done.wait [#allocation3], 384  }
  0x24   :  { %666 = vsyncadd [#allocation3], 4294966912 }
  0x25   :  { %667 = dma.done.wait [#allocation6], 3072  }
  0x26   :  { %668 = vsyncadd [#allocation6], 4294964224  ;;  %v675_v0 = vmov 0.0   ;;  %vm676_vm0 = vmmov 0   ;;  %v569_v1 = vld [vmem:[#allocation5 + $0x40] sm:$0xff]   ;;  %v572_v4 = vld [vmem:[#allocation5 + $0x48] sm:$0xff]  }
  0x27   :  { %541 = vmatprep.subr.bf16.mxu1 %v675_v0  ;;  %557 = vmatprep.mubr.msk.bf16.mxu1 %vm676_vm0, %v675_v0  ;;  %v570_v2 = vld [vmem:[#allocation5] sm:$0xff]   ;;  %v573_v5 = vld [vmem:[#allocation5 + $0x8] sm:$0xff]   ;;  %v575_v7 = vld [vmem:[#allocation5 + $0x50] sm:$0xff]  }
  0x28   :  { %510 = vmatprep.subr.bf16.mxu0 %v569_v1  ;;  %v571_v3 = vld [vmem:[#allocation5 + $0x80] sm:$0xff]   ;;  %v574_v6 = vld [vmem:[#allocation5 + $0x88] sm:$0xff]   ;;  %v576_v8 = vld [vmem:[#allocation5 + $0x10] sm:$0xff]  }
  0x29   :  { %511 = vmatpush3.bf16.msra.mxu0 %v570_v2  ;;  %542 = vmatpush3.bf16.msra.mxu1 %v571_v3  ;;  %v577_v9 = vld [vmem:[#allocation5 + $0x90] sm:$0xff]   ;;  %v578_v10 = vld [vmem:[#allocation5 + $0x58] sm:$0xff]   ;;  %v581_v13 = vld [vmem:[#allocation5 + $0x60] sm:$0xff]  }
  0x2a   :  { %512 = vmatprep.subr.bf16.mxu0 %v572_v4  ;;  %543 = vmatprep.subr.bf16.mxu1 %v675_v0  ;;  %v579_v11 = vld [vmem:[#allocation5 + $0x18] sm:$0xff]   ;;  %v582_v14 = vld [vmem:[#allocation5 + $0x20] sm:$0xff]   ;;  %v584_v16 = vld [vmem:[#allocation5 + $0x68] sm:$0xff]  }
  0x2b   :  { %v580_v12 = vld [vmem:[#allocation5 + $0x98] sm:$0xff]   ;;  %v583_v15 = vld [vmem:[#allocation5 + $0xa0] sm:$0xff]   ;;  %v585_v17 = vld [vmem:[#allocation5 + $0x28] sm:$0xff]  }
  0x2c   :  { %v586_v18 = vld [vmem:[#allocation5 + $0xa8] sm:$0xff]   ;;  %v587_v19 = vld [vmem:[#allocation5 + $0x70] sm:$0xff]   ;;  %v590_v22 = vld [vmem:[#allocation5 + $0x78] sm:$0xff]  }
  0x2d   :  { %513 = vmatpush3.bf16.msra.mxu0 %v573_v5  ;;  %544 = vmatpush3.bf16.msra.mxu1 %v574_v6  ;;  %v588_v20 = vld [vmem:[#allocation5 + $0x30] sm:$0xff]   ;;  %v742_v23 = vld [vmem:[#allocation2] sm:$0xff]  ;;  %v746_v25 = vld [vmem:[#allocation2 + $0x10] sm:$0xff] }
  0x2e   :  { %514 = vmatprep.subr.bf16.mxu0 %v575_v7  ;;  %545 = vmatprep.subr.bf16.mxu1 %v675_v0  ;;  %v589_v21 = vld [vmem:[#allocation5 + $0xb0] sm:$0xff]   ;;  %v48_v26 = vrot.slane %v742_v23, 4  ;;  %v60_v28 = vrot.slane %v746_v25, 4  ;;  %v66_v29 = vmul.f32 %v742_v23, %v742_v23  ;;  %v68_v31 = vmul.f32 %v746_v25, %v746_v25  ;;  %v591_v32 = vld [vmem:[#allocation5 + $0x38] sm:$0xff]  }
  0x2f   :  { %v744_v24 = vld [vmem:[#allocation2 + $0x8] sm:$0xff]  ;;  %v592_v37 = vld [vmem:[#allocation5 + $0xb8] sm:$0xff]  }
  0x30   :  { %v54_v27 = vrot.slane %v744_v24, 4  ;;  %v67_v30 = vmul.f32 %v744_v24, %v744_v24  ;;  %v49_v33 = vadd.f32 %v48_v26, %v742_v23  ;;  %v61_v35 = vadd.f32 %v60_v28, %v746_v25 }
  0x31   :  { %515 = vmatpush3.bf16.msra.mxu0 %v576_v8  ;;  %546 = vmatpush3.bf16.msra.mxu1 %v577_v9  ;;  %v69_v36 = vrot.slane %v66_v29, 4  ;;  %v81_v39 = vrot.slane %v68_v31, 4 }
  0x32   :  { %516 = vmatprep.subr.bf16.mxu0 %v578_v10  ;;  %547 = vmatprep.subr.bf16.mxu1 %v675_v0  ;;  %v55_v34 = vadd.f32 %v54_v27, %v744_v24  ;;  %v75_v38 = vrot.slane %v67_v30, 4  ;;  %v50_v40 = vrot.slane %v49_v33, 2  ;;  %v62_v42 = vrot.slane %v61_v35, 2  ;;  %v108_v27 = vld [vmem:[%s784_s1] sm:$0x7] }
  0x33   :  { %v70_v43 = vadd.f32 %v69_v36, %v66_v29  ;;  %v82_v45 = vadd.f32 %v81_v39, %v68_v31 }
  0x34   :  { %v56_v41 = vrot.slane %v55_v34, 2  ;;  %v76_v44 = vadd.f32 %v75_v38, %v67_v30  ;;  %v51_v46 = vadd.f32 %v50_v40, %v49_v33  ;;  %v63_v48 = vadd.f32 %v62_v42, %v61_v35 }
  0x35   :  { %517 = vmatpush3.bf16.msra.mxu0 %v579_v11  ;;  %548 = vmatpush3.bf16.msra.mxu1 %v580_v12  ;;  %v71_v49 = vrot.slane %v70_v43, 2  ;;  %v83_v51 = vrot.slane %v82_v45, 2  ;;  %v677_v30 = vmov 1966171168  }
  0x36   :  { %518 = vmatprep.subr.bf16.mxu0 %v581_v13  ;;  %549 = vmatprep.subr.bf16.mxu1 %v675_v0  ;;  %v57_v47 = vadd.f32 %v56_v41, %v55_v34  ;;  %v77_v50 = vrot.slane %v76_v44, 2  ;;  %v52_v52 = vrot.slane %v51_v46, 1  ;;  %v64_v54 = vrot.slane %v63_v48, 1 }
  0x37   :  { %v72_v55 = vadd.f32 %v71_v49, %v70_v43  ;;  %v84_v57 = vadd.f32 %v83_v51, %v82_v45  ;;  %v137_v31 = vunpack.c.l.s4 %v677_v30 }
  0x38   :  { %v58_v53 = vrot.slane %v57_v47, 1  ;;  %v78_v56 = vadd.f32 %v77_v50, %v76_v44  ;;  %v53_v58 = vadd.f32 %v52_v52, %v51_v46  ;;  %v65_v60 = vadd.f32 %v64_v54, %v63_v48 }
  0x39   :  { %519 = vmatpush3.bf16.msra.mxu0 %v582_v14  ;;  %550 = vmatpush3.bf16.msra.mxu1 %v583_v15  ;;  %v73_v61 = vrot.slane %v72_v55, 1  ;;  %v85_v63 = vrot.slane %v84_v57, 1  ;;  %v110_v15 = vlaneseq  ;;  %v138_v35 = vunpack.c.0.s8 %v137_v31 }
  0x3a   :  { %520 = vmatprep.subr.bf16.mxu0 %v584_v16  ;;  %551 = vmatprep.subr.bf16.mxu1 %v675_v0  ;;  %v59_v59 = vadd.f32 %v58_v53, %v57_v47  ;;  %v79_v62 = vrot.slane %v78_v56, 1  ;;  %v87_v1 = vmul.f32 0.125, %v53_v58  ;;  %v89_v3 = vmul.f32 0.125, %v65_v60  ;;  %v128_v53 = vld [vmem:[%s785_s2] sm:$0x7]  ;;  %s678_s2 = smov [#allocation7]  }
  0x3b   :  { %v86_v5 = vadd.f32 %v85_v63, %v84_v57  ;;  %s476_s16 = sshll.u32 %s678_s2, 4  ;;  %s477_s16 = int_to_ptr.vmem [resolvable:$true] %s476_s16 }
  0x3c   :  { %v88_v2 = vmul.f32 0.125, %v59_v59  ;;  %v80_v4 = vadd.f32 %v79_v62, %v78_v56  ;;  %v93_v7 = vmul.f32 %v87_v1, %v87_v1  ;;  %v95_v9 = vmul.f32 %v89_v3, %v89_v3  ;;  %s643_s17 = scalar_lea.vmem %s477_s16, 128  ;;  %p648_p3 = scmp.lt.s32.totalorder %s477_s16, %s477_s16 }
  0x3d   :  { %521 = vmatpush3.bf16.msra.mxu0 %v585_v17  ;;  %552 = vmatpush3.bf16.msra.mxu1 %v586_v18  ;;  %v92_v11 = vmul.f32 0.125, %v86_v5  ;;  %p644_p2 = scmp.ne.s32.totalorder %s477_s16, %s643_s17  ;;  %p649_p4 = scmp.lt.s32.totalorder %s643_s17, %s643_s17 }
  0x3e   :  { %522 = vmatprep.subr.bf16.mxu0 %v587_v19  ;;  %553 = vmatprep.subr.bf16.mxu1 %v675_v0  ;;  %v94_v8 = vmul.f32 %v88_v2, %v88_v2  ;;  %v91_v10 = vmul.f32 0.125, %v80_v4 }
  0x3f   :  { %v98_v14 = vsub.f32 %v92_v11, %v95_v9  ;;  %p650_p5 = por %p649_p4, %p648_p3 }
  0x40   :  { %v97_v13 = vsub.f32 %v91_v10, %v94_v8 }
  0x41   :  { %523 = vmatpush3.bf16.msra.mxu0 %v588_v20  ;;  %554 = vmatpush3.bf16.msra.mxu1 %v589_v21  ;;  %v101_v18 = vmax.f32 %v98_v14, 0.0  ;;  %p651_p6 = pnand %p650_p5, %p644_p2 }
  0x42   :  { %524 = vmatprep.subr.bf16.mxu0 %v590_v22  ;;  %555 = vmatprep.subr.bf16.mxu1 %v675_v0  ;;  %v74_v0 = vadd.f32 %v73_v61, %v72_v55  ;;  %v100_v17 = vmax.f32 %v97_v13, 0.0  ;;  %v111_v22 = vshrl.u32 %v110_v15, 7 }
  0x43   :  { %v104_v21 = vadd.f32 1e-05, %v101_v18 }
  0x44   :  { %v90_v6 = vmul.f32 0.125, %v74_v0  ;;  %v103_v20 = vadd.f32 1e-05, %v100_v17  ;;  %v112_v26 = vsub.s32 0, %v111_v22  ;;  %v116_v28 = vsub.s32 1, %v111_v22 }
  0x45   :  { %525 = vmatpush3.bf16.msra.mxu0 %v591_v32  ;;  %556 = vmatpush3.bf16.msra.mxu1 %v592_v37  ;;  %v120_v29 = vsub.s32 2, %v111_v22  ;;  %v141_v43 = vsub.s32 %v138_v35, %v111_v22 }
  0x46   :  { %v96_v12 = vsub.f32 %v90_v6, %v93_v7  ;;  %v113_v32 = vrot.slane %v108_v27, %v112_v26  ;;  %v117_v33 = vrot.slane %v108_v27, %v116_v28 }
  0x47   :  { %v121_v34 = vrot.slane %v108_v27, %v120_v29 }
  0x48   :  { %v99_v16 = vmax.f32 %v96_v12, 0.0 }
  0x4a   :  { %v102_v19 = vadd.f32 1e-05, %v99_v16 }
  0x4c   :  { %593 = vrsqrt.f32 %v102_v19 }
  0x4d   :  { %595 = vrsqrt.f32 %v103_v20 }
  0x4e   :  { %597 = vrsqrt.f32 %v104_v21 }
  0x56   :  { %v594_v36 = vpop.eup %593 }
  0x57   :  { %v596_v37 = vpop.eup %595  ;;  %v125_v38 = vmul.f32 %v594_v36, %v113_v32 }
  0x58   :  { %v598_v39 = vpop.eup %597  ;;  %v126_v40 = vmul.f32 %v596_v37, %v117_v33 }
  0x59   :  { %v127_v41 = vmul.f32 %v598_v39, %v121_v34  ;;  %v129_v42 = vmul.f32 %v125_v38, %v87_v1  ;;  %v163_v51 = vrot.slane %v125_v38, %v112_v26 }
  0x5a   :  { %v130_v44 = vmul.f32 %v126_v40, %v88_v2  ;;  %v167_v50 = vrot.slane %v126_v40, %v112_v26 }
  0x5b   :  { %v131_v45 = vmul.f32 %v127_v41, %v89_v3  ;;  %v171_v52 = vrot.slane %v127_v41, %v112_v26  ;;  %v172_v57 = vmul.f32 %v163_v51, %v742_v23 }
  0x5c   :  { %v135_v46 = vcombine.low %v129_v42, %v130_v44  ;;  %v173_v56 = vmul.f32 %v167_v50, %v744_v24 }
  0x5d   :  { %v149_v47 = vrot.slane %v131_v45, %v141_v43  ;;  %v174_v58 = vmul.f32 %v171_v52, %v746_v25 }
  0x5e   :  { %v142_v48 = vrot.slane %v135_v46, %v141_v43 }
  0x60   :  { %v150_v49 = vcombine.low %v142_v48, %v149_v47 }
  0x62   :  { %v157_v54 = vrot.slane %v150_v49, %v141_v43 }
  0x64   :  { %v159_v55 = vsub.f32 %v128_v53, %v157_v54 }
  0x66   :  { %v183_v59 = vrot.slane %v159_v55, %v116_v28  ;;  %v179_v60 = vrot.slane %v159_v55, %v112_v26  ;;  %v187_v61 = vrot.slane %v159_v55, %v120_v29 }
  0x68   :  { %v192_v62 = vadd.f32 %v183_v59, %v173_v56  ;;  %v191_v63 = vadd.f32 %v179_v60, %v172_v57  ;;  %v193_v0 = vadd.f32 %v187_v61, %v174_v58 }
  0x6a   :  { %v195_v1 = vpack.c.bf16 %v192_v62, %v192_v62  ;;  %v194_v2 = vpack.c.bf16 %v191_v63, %v191_v63  ;;  %v196_v3 = vpack.c.bf16 %v193_v0, %v193_v0 }
  0x6c   :  { %421 = vmatprep.mubr.bf16.mxu0 %v195_v1  ;;  %558 = vmatmul.mubr.bf16.vlgmr.msra.gmra.mrb[0].mxu1 %v196_v3 }
  0x6d   :  { %422 = vmatmul.mubr.bf16.vlgmr.msra.gmra.mrb[0].mxu0 %v194_v2 }
 0x13f   :  { %v463_v4 = vpop.f32.mrb[0].mxu1 }
 0x140   :  { %v526_v5 = vpop.f32.mrb[0].mxu0  ;;  %v559_v6 = vpop.f32.mrb[1].mxu1 }
 0x141   :  { %v527_v24 = vpop.f32.mrb[1].mxu0  ;;  %v466_v7 = vpop.f32.mrb[2].mxu1 }
 0x142   :  { %v528_v23 = vadd.f32 %v527_v24, %v526_v5  ;;  %v529_v25 = vpop.f32.mrb[2].mxu0  ;;  %v560_v8 = vpop.f32.mrb[3].mxu1 }
 0x143   :  { %v530_v9 = vpop.f32.mrb[3].mxu0 }
 0x144   :  { %v464_v10 = vadd.f32 %v528_v23, %v463_v4 }
 0x146   :  { %469 = vst [vmem:[#allocation7] sm:$0xff] %v464_v10 }
 0x147   :  { %654 = shalt.err (!%p651_p6)
}
 0x148   :  { %s655_s20 = scalar_lea.hbm %s787_s4, 128 }
 0x149   :  { %p656_p7 = scmp.ne.s32.totalorder %s787_s4, %s655_s20  ;;  %p659_p8 = scmp.lt.u32.totalorder %s655_s20, %s787_s4 }
 0x14b   :  { %p661_p9 = pnand %p659_p8, %p656_p7 }
 0x14d   :  { %664 = shalt.err (!%p661_p9)
}
 0x14e   :  { %479 = dma.vmem_to_hbm [thread:$0]  %s477_s16, 128, %s787_s4, [#allocation4]  }
 0x14f   :  { %669 = dma.done.wait [#allocation4], 128  }
 0x150   :  { %670 = vsyncadd [#allocation4], 4294967168 }
 0x151   :  { %483 = vsyncpa [#allocation3], 1 }
 0x152   :  { %484 = vsyncpa [#allocation6], 1 }
 0x153   :  { %485 = vsyncpa [#allocation4], 1 }

</bundles_post_ra>
